<compile_context>
chip_gen: v5e
topology: v5e:2x2
jax: 0.10.0
libtpu: 0.0.40
codegen_flags: <defaults>
</compile_context>

<pallas_src>
import functools

import jax
import jax.numpy as jnp
from jax import lax
from jax.experimental import pallas as pl
from jax.experimental.pallas import tpu as pltpu


def _consensus_avg_kernel(x_ref, o_ref, acc_ref, *, inv_s, seg_total, seg_tile,
                          mask_seg_tail):
    """Accumulate one (tb, ts, C) input block into a (tb, C) f32 scratch."""
    j = pl.program_id(1)  # segment-tile (reduction) axis, last in the grid

    @pl.when(j == 0)
    def _init():
        acc_ref[...] = jnp.zeros_like(acc_ref)

    x = x_ref[...]
    if mask_seg_tail:
        # Ragged S tiling: zero the out-of-range segment rows of the final
        # partial block before they enter the sum.
        rem = seg_total - j * seg_tile
        seg_ids = lax.broadcasted_iota(jnp.int32, x.shape, 1)
        x = jnp.where(seg_ids < rem, x, jnp.zeros_like(x))

    # f32 accumulation without materializing a full f32 copy of the block.
    acc_ref[...] += jnp.sum(x, axis=1, dtype=jnp.float32)

    @pl.when(j == pl.num_programs(1) - 1)
    def _finalize():
        o_ref[...] = (acc_ref[...] * inv_s).astype(o_ref.dtype)


def _sublane_pack(itemsize):
    # Sublane packing factor per dtype width: f32 -> 8, bf16 -> 16, int8 -> 32.
    return {4: 8, 2: 16, 1: 32}.get(itemsize, 8)


def _choose_tiles(n, s, c, itemsize, in_budget_bytes):
    """Pick (batch_tile, segment_tile).

    The budget covers the double-buffered input block plus a potential f32
    temp of the block (2 * itemsize + 4 bytes resident per element).
    """
    pack = _sublane_pack(itemsize)
    bytes_per_elem = 2 * itemsize + 4
    per_row = s * c * bytes_per_elem
    tb_fit = max(1, in_budget_bytes // max(per_row, 1))

    if tb_fit >= min(n, pack):
        # Full-S blocks; tile over batch only.
        ts = s
        if n <= pack:
            tb = n  # full-dim block: no (8,128) alignment needed
        else:
            tb = min(tb_fit, n)
            # Keep >=4 (or >=2) batch tiles so the "parallel" axis can shard
            # across both TensorCores on v7x.
            if n >= 4 * pack:
                tb = min(tb, pl.cdiv(n, 4))
            elif n >= 2 * pack:
                tb = min(tb, pl.cdiv(n, 2))
            tb = max(pack, (tb // pack) * pack)
        return int(tb), int(ts)

    # Per-row footprint too large for an aligned full-S block: keep tb at the
    # sublane pack (or full n) and tile the segment (reduction) axis instead.
    tb = n if n <= pack else pack
    ts_fit = max(1, in_budget_bytes // max(tb * c * bytes_per_elem, 1))
    if ts_fit >= s:
        ts = s
    else:
        ts = min(s, max(8, (ts_fit // 8) * 8))  # sublane-aligned segment tile
    return int(tb), int(ts)


_FALLBACK_VMEM_BYTES = 32 * 1024 * 1024  # conservative scoped default


def _vmem_capacity_bytes():
    try:
        return int(pltpu.get_tpu_info().vmem_capacity_bytes)
    except Exception:
        return _FALLBACK_VMEM_BYTES


def simple_consensus_avg(x, *, vmem_budget_bytes=None):
    """Mean over dim=1 with keepdim=True (SimpleConsensus 'avg' forward).

    x: (N, S, C) array. Returns (N, 1, C) of the same dtype.
    """
    n, s, c = x.shape
    itemsize = jnp.dtype(x.dtype).itemsize

    vmem_cap = _vmem_capacity_bytes()
    in_budget = (vmem_budget_bytes if vmem_budget_bytes is not None
                 else int(vmem_cap * 0.5))
    tb, ts = _choose_tiles(n, s, c, itemsize, in_budget)

    grid = (pl.cdiv(n, tb), pl.cdiv(s, ts))

    kernel = functools.partial(
        _consensus_avg_kernel,
        inv_s=1.0 / float(s),
        seg_total=s,
        seg_tile=ts,
        mask_seg_tail=(s % ts != 0),
    )

    cost = pl.CostEstimate(
        flops=n * s * c + n * c,
        transcendentals=0,
        bytes_accessed=n * s * c * itemsize + n * c * itemsize,
    )

    out2d = pl.pallas_call(
        kernel,
        out_shape=jax.ShapeDtypeStruct((n, c), x.dtype),
        grid_spec=pltpu.PrefetchScalarGridSpec(
            num_scalar_prefetch=0,
            grid=grid,
            in_specs=[pl.BlockSpec((tb, ts, c), lambda i, j: (i, j, 0))],
            out_specs=pl.BlockSpec((tb, c), lambda i, j: (i, 0)),
            scratch_shapes=[pltpu.VMEM((tb, c), jnp.float32)],
        ),
        compiler_params=pltpu.CompilerParams(
            dimension_semantics=("parallel", "arbitrary"),
            vmem_limit_bytes=int(vmem_cap * 0.7),
        ),
        cost_estimate=cost,
    )(x)

    # keepdim=1 axis is added by a free wrapper-side reshape.
    return out2d.reshape(n, 1, c)


if __name__ == "__main__":
    key = jax.random.PRNGKey(0)

    # batch=2, segments=8, hidden=32 (typical SimpleConsensus input).
    x = jax.random.normal(key, (2, 8, 32), dtype=jnp.float32)
    out = jax.block_until_ready(simple_consensus_avg(x))
    ref = jnp.mean(x, axis=1, keepdims=True)
    assert out.shape == (2, 1, 32), out.shape
    assert jnp.allclose(out, ref, atol=1e-5, rtol=1e-5)

    # Ragged batch (N not a multiple of the batch tile): exercises the
    # pad-free masked boundary block.
    x2 = jax.random.normal(jax.random.PRNGKey(1), (10, 8, 32), dtype=jnp.float32)
    out2 = jax.block_until_ready(simple_consensus_avg(x2))
    ref2 = jnp.mean(x2, axis=1, keepdims=True)
    assert out2.shape == (10, 1, 32), out2.shape
    assert jnp.allclose(out2, ref2, atol=1e-5, rtol=1e-5)

    # Tiny artificial budget forces the segment-tiled (reduction grid axis)
    # fallback with a ragged segment tail, exercising the accumulator path.
    x3 = jax.random.normal(jax.random.PRNGKey(2), (9, 20, 128), dtype=jnp.float32)
    out3 = jax.block_until_ready(
        simple_consensus_avg(x3, vmem_budget_bytes=120_000))
    ref3 = jnp.mean(x3, axis=1, keepdims=True)
    assert out3.shape == (9, 1, 128), out3.shape
    assert jnp.allclose(out3, ref3, atol=1e-5, rtol=1e-5)

    print("KERNEL_OK")
</pallas_src>

<mosaic_0001>
module attributes {stable_mosaic.version = 11 : i64} {
  func.func @_consensus_avg_kernel(%arg0: i32, %arg1: i32, %arg2: memref<2x8x32xf32, #tpu.memory_space<vmem>>, %arg3: memref<2x32xf32, #tpu.memory_space<vmem>>, %arg4: memref<2x32xf32, #tpu.memory_space<vmem>>) attributes {dimension_semantics = [#tpu.dimension_semantics<parallel>, #tpu.dimension_semantics<arbitrary>], iteration_bounds = array<i64: 1, 1>, scalar_prefetch = 0 : i64, scratch_operands = 1 : i64, tpu.core_type = #tpu.core_type<tc>, window_params = [{transform_indices = @transform_0, window_bounds = array<i64: 2, 8, 32>}, {transform_indices = @transform_1, window_bounds = array<i64: 2, 32>}]} {
    %c0_i32 = arith.constant 0 : i32
    %0 = arith.cmpi eq, %arg1, %c0_i32 : i32
    %1 = arith.extui %0 : i1 to i32
    %c0_i32_0 = arith.constant 0 : i32
    %2 = arith.cmpi ne, %1, %c0_i32_0 : i32
    scf.if %2 {
      %cst_9 = arith.constant 0.000000e+00 : f32
      %11 = vector.broadcast %cst_9 : f32 to vector<2x32xf32>
      %c0_10 = arith.constant 0 : index
      %c0_11 = arith.constant 0 : index
      %12 = vector.load %arg4[%c0_10, %c0_11] : memref<2x32xf32, #tpu.memory_space<vmem>>, vector<2x32xf32>
      tpu.vector_store %arg4[%c0_10, %c0_11], %11 {strides = array<i32>} : memref<2x32xf32, #tpu.memory_space<vmem>>, vector<2x32xf32>,
    } else {
    }
    %c0 = arith.constant 0 : index
    %c0_1 = arith.constant 0 : index
    %c0_2 = arith.constant 0 : index
    %3 = vector.load %arg2[%c0, %c0_1, %c0_2] : memref<2x8x32xf32, #tpu.memory_space<vmem>>, vector<2x8x32xf32>
    %c0_3 = arith.constant 0 : index
    %c0_4 = arith.constant 0 : index
    %4 = vector.load %arg4[%c0_3, %c0_4] : memref<2x32xf32, #tpu.memory_space<vmem>>, vector<2x32xf32>
    %cst = arith.constant dense<0.000000e+00> : vector<2x32xf32>
    %5 = vector.multi_reduction <add>, %3, %cst [1] : vector<2x8x32xf32> to vector<2x32xf32>
    %6 = arith.addf %4, %5 : vector<2x32xf32>
    %c0_5 = arith.constant 0 : index
    %c0_6 = arith.constant 0 : index
    %7 = vector.load %arg4[%c0_5, %c0_6] : memref<2x32xf32, #tpu.memory_space<vmem>>, vector<2x32xf32>
    tpu.vector_store %arg4[%c0_5, %c0_6], %6 {strides = array<i32>} : memref<2x32xf32, #tpu.memory_space<vmem>>, vector<2x32xf32>,
    %c0_i32_7 = arith.constant 0 : i32
    %8 = arith.cmpi eq, %arg1, %c0_i32_7 : i32
    %9 = arith.extui %8 : i1 to i32
    %c0_i32_8 = arith.constant 0 : i32
    %10 = arith.cmpi ne, %9, %c0_i32_8 : i32
    scf.if %10 {
      %c0_9 = arith.constant 0 : index
      %c0_10 = arith.constant 0 : index
      %11 = vector.load %arg4[%c0_9, %c0_10] : memref<2x32xf32, #tpu.memory_space<vmem>>, vector<2x32xf32>
      %cst_11 = arith.constant 1.250000e-01 : f32
      %12 = vector.broadcast %cst_11 : f32 to vector<2x32xf32>
      %13 = arith.mulf %11, %12 : vector<2x32xf32>
      %c0_12 = arith.constant 0 : index
      %c0_13 = arith.constant 0 : index
      %14 = vector.load %arg3[%c0_12, %c0_13] : memref<2x32xf32, #tpu.memory_space<vmem>>, vector<2x32xf32>
      tpu.vector_store %arg3[%c0_12, %c0_13], %13 {strides = array<i32>} : memref<2x32xf32, #tpu.memory_space<vmem>>, vector<2x32xf32>,
    } else {
    }
    return
  }
  func.func @transform_0(%arg0: i32, %arg1: i32) -> (i32, i32, i32) {
    %c0_i32 = arith.constant 0 : i32
    %c0_i32_0 = arith.constant 0 : i32
    return %arg0, %arg1, %c0_i32 : i32, i32, i32
  }
  func.func @transform_1(%arg0: i32, %arg1: i32) -> (i32, i32) {
    %c0_i32 = arith.constant 0 : i32
    %c0_i32_0 = arith.constant 0 : i32
    return %arg0, %c0_i32 : i32, i32
  }
}

</mosaic_0001>

<bundles_post_ra>
// kernel: tpu_custom_call.1
= control target key start
LH: loop header
LB: loop body
LE: loop exit
PB: predicated region body
PF: predicated region fallthrough
CT: control target
= control target key end

     0   :  { %6 = vsyncpa [#allocation4], 0  ;;  %s161_s0 = inlined_call_operand.hbm [shape: f32[2,8,32], index: 0, kind: input, shape index: {}]   ;;  %s162_s1 = inlined_call_operand.hbm [shape: f32[2,32], index: 1, kind: output, shape index: {}]  }
   0x1   :  { %7 = vsyncpa [#allocation5], 0  ;;  %s12_s8 = sshll.u32 %s161_s0, 4  ;;  %s137_s9 = smov [#allocation3]   ;;  %s13_s8 = int_to_ptr.hbm [resolvable:$true] %s12_s8 }
   0x2   :  { %s14_s10 = sshll.u32 %s137_s9, 4  ;;  %s138_s11 = smov 128   ;;  %s15_s10 = int_to_ptr.vmem [resolvable:$true] %s14_s10 }
   0x3   :  { %s139_s12 = smov 8  }
   0x4   :  { %20 = dma.hbm_to_vmem [thread:$0]  %s13_s8, 256, %s15_s10, [#allocation4], %s138_s11, %s138_s11, %s139_s12  }
   0x5   :  { %133 = dma.done.wait [#allocation4], 256  }
   0x6   :  { %134 = vsyncadd [#allocation4], 4294967040  ;;  %vm29_vm0 = vcmask 254976   ;;  %v140_v0 = vmov 0.0   ;;  %vm34_vm1 = vcmask 261120   ;;  %v31_v1 = vld [vmem:[#allocation3] sm:$0xff] }
   0x7   :  { %30 = vst.msk [vmem:[#allocation2] sm:$0x3] %vm29_vm0, %v140_v0  ;;  %v32_v2 = vld [vmem:[#allocation3 + $0x8] sm:$0xff]  ;;  %v35_v3 = vsel %vm34_vm1, %v31_v1, 0.0  ;;  %vm51_vm2 = vcmask 1041409   ;;  %s141_s0 = smov [#allocation6]  }
   0x8   :  { %v42_v4 = vsel %vm34_vm1, %v32_v2, 0.0  ;;  %v36_v5 = vrot.slane %v35_v3, 4  ;;  %s68_s13 = sshll.u32 %s141_s0, 4  ;;  %s70_s16 = sshll.u32 %s162_s1, 4  ;;  %s69_s13 = int_to_ptr.vmem [resolvable:$true] %s68_s13  ;;  %s71_s16 = int_to_ptr.hbm [resolvable:$true] %s70_s16 }
   0x9   :  { %v43_v6 = vrot.slane %v42_v4, 4 }
   0xa   :  { %v37_v7 = vadd.f32 %v36_v5, %v35_v3 }
   0xb   :  { %v44_v8 = vadd.f32 %v43_v6, %v42_v4 }
   0xc   :  { %v38_v9 = vrot.slane %v37_v7, 2 }
   0xd   :  { %v45_v10 = vrot.slane %v44_v8, 2 }
   0xe   :  { %v39_v11 = vadd.f32 %v38_v9, %v37_v7  ;;  %v33_v15 = vld [vmem:[#allocation2] sm:$0x3] }
   0xf   :  { %v46_v12 = vadd.f32 %v45_v10, %v44_v8 }
  0x10   :  { %v40_v13 = vrot.slane %v39_v11, 1 }
  0x11   :  { %v47_v14 = vrot.slane %v46_v12, 1 }
  0x12   :  { %v41_v16 = vadd.f32 %v40_v13, %v39_v11 }
  0x13   :  { %v48_v17 = vadd.f32 %v47_v14, %v46_v12 }
  0x15   :  { %v52_v18 = vsel %vm51_vm2, %v48_v17, %v41_v16 }
  0x16   :  { %v54_v19 = vadd.f32 %v52_v18, %v33_v15 }
  0x18   :  { %56 = vst.msk [vmem:[#allocation2] sm:$0x3] %vm29_vm0, %v54_v19 }
  0x1f   :  { %v60_v20 = vld [vmem:[#allocation2] sm:$0x3] }
  0x20   :  { %v61_v21 = vmul.f32 0.125, %v60_v20 }
  0x22   :  { %62 = vst.msk [vmem:[#allocation6] sm:$0x3] %vm29_vm0, %v61_v21 }
  0x23   :  { %73 = dma.vmem_to_hbm [thread:$0]  %s69_s13, 32, %s71_s16, [#allocation5]  }
  0x24   :  { %135 = dma.done.wait [#allocation5], 32  }
  0x25   :  { %136 = vsyncadd [#allocation5], 4294967264 }
  0x26   :  { %78 = vsyncpa [#allocation4], 1 }
  0x27   :  { %79 = vsyncpa [#allocation5], 1 }

</bundles_post_ra>
